<compile_context>
chip_gen: v7x
topology: tpu7x:2x2x1
jax: 0.10.0
libtpu: 0.0.40
codegen_flags: <defaults>
</compile_context>

<pallas_src>
import jax
import jax.numpy as jnp
from jax.experimental import pallas as pl
from jax.experimental.pallas import tpu as pltpu


def _cdiv(a, b):
    return -(-a // b)


def _round_up(x, m):
    return ((x + m - 1) // m) * m


def qmodel_kernel(x_ref, w1_ref, b1_ref, w2_ref, b2_ref, o_ref):
    # fc_1: bf16 operands -> MXU, f32 accumulate; bias add + ReLU in f32 (VPU).
    x = x_ref[...].astype(jnp.bfloat16)
    h = jnp.dot(x, w1_ref[...], preferred_element_type=jnp.float32)
    h = jnp.maximum(h + b1_ref[...], 0.0)

    # fc_2: cast activations to bf16 for the MXU; logits / bias stay f32.
    logits = jnp.dot(h.astype(jnp.bfloat16), w2_ref[...],
                     preferred_element_type=jnp.float32) + b2_ref[...]

    # Softmax over the last dim (nn.Softmax on a 2D tensor -> dim=1).
    # Exact divide so rows sum to 1 to f32 precision.
    m = jnp.max(logits, axis=-1, keepdims=True)
    e = jnp.exp(logits - m)
    o_ref[...] = e / jnp.sum(e, axis=-1, keepdims=True)


def qmodel_forward(state, w1, b1, w2, b2, *, tb=1024, min_steps=1):
    """state:(B,in_d) f32; w1:(in_d,hidden) b1:(1,hidden) w2:(hidden,out_d) b2:(1,out_d).

    min_steps: set to 2 on v7x (2 TensorCores/chip) so the "parallel" grid axis
    actually has work for both cores; leave at 1 on v5e/v6e for small B.
    """
    B, in_d = state.shape
    hidden_d = w1.shape[1]
    out_d = w2.shape[1]

    # ---- parameters stored bf16 (MXU-native); biases stay f32 ----
    w1b = w1.astype(jnp.bfloat16)
    w2b = w2.astype(jnp.bfloat16)
    b1f = b1.astype(jnp.float32)
    b2f = b2.astype(jnp.float32)

    # ---- balanced batch tiling (pad at most 7 rows per step) ----
    nsteps = max(min_steps, _cdiv(B, tb))
    TB = _round_up(_cdiv(B, nsteps), 8)
    Bp = TB * nsteps
    if Bp != B:
        state_p = jnp.zeros((Bp, in_d), state.dtype).at[:B].set(state)
    else:
        state_p = state

    # ---- explicit VMEM budget (double-buffered state/out tiles + resident weights) ----
    need = (
        2 * (TB * in_d * state_p.dtype.itemsize)       # state tiles
        + 2 * (TB * out_d * 4)                          # output tiles (f32)
        + 2 * (in_d * hidden_d * 2 + hidden_d * out_d * 2)  # bf16 weights
        + 2 * (hidden_d * 4 + out_d * 4)                # f32 biases
    )
    vmem_limit = int(min(max(4 * need, 16 << 20), 48 << 20))

    out_padded = pl.pallas_call(
        qmodel_kernel,
        out_shape=jax.ShapeDtypeStruct((Bp, out_d), jnp.float32),
        grid_spec=pl.GridSpec(
            grid=(nsteps,),
            in_specs=[
                # state tile moves with the grid step (pipelined DMA)
                pl.BlockSpec((TB, in_d), lambda i: (i, 0)),
                # weights / biases: constant block index -> VMEM-resident across steps
                pl.BlockSpec((in_d, hidden_d), lambda i: (0, 0)),
                pl.BlockSpec((1, hidden_d), lambda i: (0, 0)),
                pl.BlockSpec((hidden_d, out_d), lambda i: (0, 0)),
                pl.BlockSpec((1, out_d), lambda i: (0, 0)),
            ],
            # (TB, out_d) store: out_d equals the full last dim, so no lane padding;
            # 16x less HBM writeback than the previous 128-wide padded output.
            out_specs=pl.BlockSpec((TB, out_d), lambda i: (i, 0)),
        ),
        compiler_params=pltpu.CompilerParams(
            dimension_semantics=("parallel",),
            vmem_limit_bytes=vmem_limit,
        ),
    )(state_p, w1b, b1f, w2b, b2f)

    # trim the (at most 7-row) batch padding
    return out_padded[:B]


def reference_forward(state, w1, b1, w2, b2):
    h = jnp.maximum(state @ w1 + b1, 0.0)
    logits = h @ w2 + b2
    return jax.nn.softmax(logits, axis=-1)


if __name__ == "__main__":
    # small shapes consistent with the module: QModel(in_d=16, out_d=8, hidden_d=32)
    # B=16 with tb=8 exercises a multi-step (pipelined, "parallel") grid.
    B, in_d, hidden_d, out_d = 16, 16, 32, 8

    key = jax.random.PRNGKey(0)
    k_x, k_w1, k_b1, k_w2, k_b2 = jax.random.split(key, 5)

    state = jax.random.normal(k_x, (B, in_d), dtype=jnp.float32)
    # deterministic synthetic parameters (Linear weights stored as (in, out))
    w1 = jax.random.normal(k_w1, (in_d, hidden_d), dtype=jnp.float32) * 0.1
    b1 = jax.random.normal(k_b1, (1, hidden_d), dtype=jnp.float32) * 0.1
    w2 = jax.random.normal(k_w2, (hidden_d, out_d), dtype=jnp.float32) * 0.1
    b2 = jax.random.normal(k_b2, (1, out_d), dtype=jnp.float32) * 0.1

    out = qmodel_forward(state, w1, b1, w2, b2, tb=8)
    out = jax.block_until_ready(out)

    ref = reference_forward(state, w1, b1, w2, b2)
    assert out.shape == (B, out_d)
    # bf16 MXU operands vs. f32 reference -> relaxed elementwise tolerance
    assert jnp.allclose(out, ref, atol=2e-2, rtol=2e-2), "mismatch vs reference"
    # exact softmax divide -> rows sum to 1 to f32 precision
    assert jnp.allclose(jnp.sum(out, axis=-1), 1.0, atol=1e-4), "softmax rows must sum to ~1"

    print("KERNEL_OK")
</pallas_src>

<mosaic_0001>
module attributes {stable_mosaic.version = 11 : i64} {
  func.func @qmodel_kernel(%arg0: i32, %arg1: memref<8x16xf32, #tpu.memory_space<vmem>>, %arg2: memref<16x32xbf16, #tpu.memory_space<vmem>>, %arg3: memref<1x32xf32, #tpu.memory_space<vmem>>, %arg4: memref<32x8xbf16, #tpu.memory_space<vmem>>, %arg5: memref<1x8xf32, #tpu.memory_space<vmem>>, %arg6: memref<8x8xf32, #tpu.memory_space<vmem>>) attributes {dimension_semantics = [#tpu.dimension_semantics<parallel>], iteration_bounds = array<i64: 2>, scalar_prefetch = 0 : i64, scratch_operands = 0 : i64, tpu.core_type = #tpu.core_type<tc>, window_params = [{transform_indices = @transform_0, window_bounds = array<i64: 8, 16>}, {pipeline_mode = #tpu.pipeline_mode<synchronous>, transform_indices = @transform_1, window_bounds = array<i64: 16, 32>}, {pipeline_mode = #tpu.pipeline_mode<synchronous>, transform_indices = @transform_2, window_bounds = array<i64: 1, 32>}, {pipeline_mode = #tpu.pipeline_mode<synchronous>, transform_indices = @transform_3, window_bounds = array<i64: 32, 8>}, {pipeline_mode = #tpu.pipeline_mode<synchronous>, transform_indices = @transform_4, window_bounds = array<i64: 1, 8>}, {transform_indices = @transform_5, window_bounds = array<i64: 8, 8>}]} {
    %c0 = arith.constant 0 : index
    %c0_0 = arith.constant 0 : index
    %0 = vector.load %arg1[%c0, %c0_0] : memref<8x16xf32, #tpu.memory_space<vmem>>, vector<8x16xf32>
    %1 = arith.truncf %0 : vector<8x16xf32> to vector<8x16xbf16>
    %c0_1 = arith.constant 0 : index
    %c0_2 = arith.constant 0 : index
    %2 = vector.load %arg2[%c0_1, %c0_2] : memref<16x32xbf16, #tpu.memory_space<vmem>>, vector<16x32xbf16>
    %cst = arith.constant dense<0.000000e+00> : vector<8x32xf32>
    %3 = tpu.matmul %1, %2, %cst {dimension_numbers = #tpu.dot_dimension_numbers<[1], [0], [0], [1], [0, 0, 1, 1], [], []>} : vector<8x16xbf16>, vector<16x32xbf16>, vector<8x32xf32> -> vector<8x32xf32>
    %c0_3 = arith.constant 0 : index
    %c0_4 = arith.constant 0 : index
    %4 = vector.load %arg3[%c0_3, %c0_4] : memref<1x32xf32, #tpu.memory_space<vmem>>, vector<1x32xf32>
    %5 = vector.broadcast %4 : vector<1x32xf32> to vector<8x32xf32>
    %6 = arith.addf %3, %5 : vector<8x32xf32>
    %cst_5 = arith.constant 0.000000e+00 : f32
    %7 = vector.broadcast %cst_5 : f32 to vector<8x32xf32>
    %8 = arith.maximumf %6, %7 : vector<8x32xf32>
    %9 = arith.truncf %8 : vector<8x32xf32> to vector<8x32xbf16>
    %c0_6 = arith.constant 0 : index
    %c0_7 = arith.constant 0 : index
    %10 = vector.load %arg4[%c0_6, %c0_7] : memref<32x8xbf16, #tpu.memory_space<vmem>>, vector<32x8xbf16>
    %cst_8 = arith.constant dense<0.000000e+00> : vector<8x8xf32>
    %11 = tpu.matmul %9, %10, %cst_8 {dimension_numbers = #tpu.dot_dimension_numbers<[1], [0], [0], [1], [0, 0, 1, 1], [], []>} : vector<8x32xbf16>, vector<32x8xbf16>, vector<8x8xf32> -> vector<8x8xf32>
    %c0_9 = arith.constant 0 : index
    %c0_10 = arith.constant 0 : index
    %12 = vector.load %arg5[%c0_9, %c0_10] : memref<1x8xf32, #tpu.memory_space<vmem>>, vector<1x8xf32>
    %13 = vector.broadcast %12 : vector<1x8xf32> to vector<8x8xf32>
    %14 = arith.addf %11, %13 : vector<8x8xf32>
    %cst_11 = arith.constant dense<0xFF800000> : vector<8xf32>
    %15 = vector.multi_reduction <maximumf>, %14, %cst_11 [1] : vector<8x8xf32> to vector<8xf32>
    %16 = vector.shape_cast %15 : vector<8xf32> to vector<8x1xf32>
    %17 = vector.broadcast %16 : vector<8x1xf32> to vector<8x8xf32>
    %18 = arith.subf %14, %17 : vector<8x8xf32>
    %19 = math.exp %18 : vector<8x8xf32>
    %cst_12 = arith.constant dense<0.000000e+00> : vector<8xf32>
    %20 = vector.multi_reduction <add>, %19, %cst_12 [1] : vector<8x8xf32> to vector<8xf32>
    %21 = vector.shape_cast %20 : vector<8xf32> to vector<8x1xf32>
    %22 = vector.broadcast %21 : vector<8x1xf32> to vector<8x8xf32>
    %23 = arith.divf %19, %22 : vector<8x8xf32>
    %c0_13 = arith.constant 0 : index
    %c0_14 = arith.constant 0 : index
    %24 = vector.load %arg6[%c0_13, %c0_14] : memref<8x8xf32, #tpu.memory_space<vmem>>, vector<8x8xf32>
    tpu.vector_store %arg6[%c0_13, %c0_14], %23 {strides = array<i32>} : memref<8x8xf32, #tpu.memory_space<vmem>>, vector<8x8xf32>,
    return
  }
  func.func @transform_0(%arg0: i32) -> (i32, i32) {
    %c0_i32 = arith.constant 0 : i32
    %c0_i32_0 = arith.constant 0 : i32
    return %arg0, %c0_i32 : i32, i32
  }
  func.func @transform_1(%arg0: i32) -> (i32, i32) {
    %c0_i32 = arith.constant 0 : i32
    %c0_i32_0 = arith.constant 0 : i32
    %c0_i32_1 = arith.constant 0 : i32
    return %c0_i32, %c0_i32_0 : i32, i32
  }
  func.func @transform_2(%arg0: i32) -> (i32, i32) {
    %c0_i32 = arith.constant 0 : i32
    %c0_i32_0 = arith.constant 0 : i32
    %c0_i32_1 = arith.constant 0 : i32
    return %c0_i32, %c0_i32_0 : i32, i32
  }
  func.func @transform_3(%arg0: i32) -> (i32, i32) {
    %c0_i32 = arith.constant 0 : i32
    %c0_i32_0 = arith.constant 0 : i32
    %c0_i32_1 = arith.constant 0 : i32
    return %c0_i32, %c0_i32_0 : i32, i32
  }
  func.func @transform_4(%arg0: i32) -> (i32, i32) {
    %c0_i32 = arith.constant 0 : i32
    %c0_i32_0 = arith.constant 0 : i32
    %c0_i32_1 = arith.constant 0 : i32
    return %c0_i32, %c0_i32_0 : i32, i32
  }
  func.func @transform_5(%arg0: i32) -> (i32, i32) {
    %c0_i32 = arith.constant 0 : i32
    %c0_i32_0 = arith.constant 0 : i32
    return %arg0, %c0_i32 : i32, i32
  }
}

</mosaic_0001>

<bundles_post_ra>
// kernel: tpu_custom_call.1
= control target key start
LH: loop header
LB: loop body
LE: loop exit
PB: predicated region body
PF: predicated region fallthrough
CT: control target
= control target key end

     0   :  { %10 = vsyncpa [#allocation3], 0  ;;  %s586_s18 = smov 0   ;;  %s664_s0 = inlined_call_operand.vmem [shape: f32[16,16], index: 0, kind: input, shape index: {}]   ;;  %s665_s1 = inlined_call_operand.hbm [shape: bf16[16,32], index: 1, kind: input, shape index: {}]   ;;  %s666_s2 = inlined_call_operand.vmem [shape: f32[1,32], index: 2, kind: input, shape index: {}]   ;;  %s667_s3 = inlined_call_operand.vmem [shape: bf16[32,8], index: 3, kind: input, shape index: {}]   ;;  %s668_s4 = inlined_call_operand.vmem [shape: f32[1,8], index: 4, kind: input, shape index: {}]   ;;  %s669_s5 = inlined_call_operand.vmem [shape: f32[16,8], index: 5, kind: output, shape index: {}]  }
   0x1 LB: > { %s592_s19 = sadd.s32 4294967295, %s549_s18   ;;  %p446_p0 = scmp.ge.s32.totalorder %s549_s18, 1  ;;  %s549_s18 = sphi %s586_s18, %s16_s18  }
   0x2   : > { %p157_p1 = scmp.lt.s32.totalorder %s549_s18, 3  ;;  %s551_s20 = smov [#allocation2]  }
   0x3   : > { %s169_s21 = sshll.u32 %s551_s20, 4  ;;  %p670_p3 = scmp.eq.s32.totalorder %s592_s19, 0  ;;  %s170_s21 = int_to_ptr.vmem [resolvable:$true] %s169_s21 }
   0x4   : > { %p596_p2 = pnand %p446_p0, %p157_p1  ;;  %s511_s26 = scalar_lea.hbm %s665_s1, 128 }
   0x5   : > { %p512_p6 = scmp.ne.s32.totalorder %s665_s1, %s511_s26  ;;  %p518_p10 = scmp.lt.u32.totalorder %s511_s26, %s665_s1 }
   0x6   : > { %s672_s22 = scalar_select %p596_p2, 1, 0 }
   0x7   : > { %p485_p4 = pneg %p596_p2 }
   0x9   : > { %p605_p5 = pnand %p670_p3, %p485_p4 }
   0xb   : > { %p513_p7 = pneg %p605_p5 }
   0xd   : > { %p514_p8 = pnand %p513_p7, %p512_p6 }
   0xf   : > { %p515_p9 = pneg %p514_p8 }
  0x11   : > { %p520_p11 = pnand %p518_p10, %p515_p9 }
  0x13   : > { %523 = shalt.err (!%p520_p11)
}
  0x14   : > { %s524_s6 = scalar_lea.vmem %s170_s21, 128  ;;  %p532_p1 = scmp.lt.s32.totalorder %s170_s21, %s170_s21 }
  0x15   : > { %p525_p12 = scmp.ne.s32.totalorder %s170_s21, %s524_s6  ;;  %p533_p4 = scmp.lt.s32.totalorder %s524_s6, %s524_s6 }
  0x17   : > { %p527_p13 = pnand %p525_p12, %p513_p7  ;;  %p534_p3 = por %p533_p4, %p532_p1 }
  0x19   : > { %p528_p0 = pneg %p527_p13 }
  0x1b   : > { %p535_p2 = pnand %p534_p3, %p528_p0 }
  0x1d   : > { %538 = shalt.err (!%p535_p2)
}
  0x1e   : > { %s552_s7 = smov 64   ;;  %s553_s8 = smov 4  }
  0x1f   : > { %488 = dma.hbm_to_vmem [thread:$0]  (!%p605_p5), %s665_s1, 128, %s170_s21, [#allocation3], %s552_s7, %s552_s7, %s553_s8  }
  0x20   : > { %p674_p6 = scmp.ne.s32.totalorder %s672_s22, 0 }
  0x21   : > { %p675_p8 = scmp.eq.s32.totalorder (!%p674_p6), %s592_s19, 0 }
  0x22   : > { %201 = sbr.rel (%p674_p6) target bundleno = 797 (0x31d), region = 40 }
  0x29   : > { %544 = dma.done.wait (%p675_p8), [#allocation3], 128   ;;  %p676_p7 = pmov %p675_p8 }
  0x2a   : > { %p227_p2 = scmp.lt.s32.totalorder %s592_s19, 1  ;;  %v554_v0 = vmov 0.0   ;;  %vm555_vm0 = vmmov 0   ;;  %v504_v1 = vld [vmem:[#allocation2] sm:$0xff]   ;;  %vm253_vm1 = vcmask 130048   ;;  %v506_v5 = vld [vmem:[%s667_s3 + $0x8] sm:$0xff]  }
  0x2b   : > { %546 = vsyncadd (%p676_p7), [#allocation3], 4294967168  ;;  %467 = vmatprep.subr.bf16.mxu0 %v554_v0  ;;  %469 = vmatprep.mubr.msk.bf16.mxu0 %vm555_vm0, %v554_v0  ;;  %v505_v4 = vld [vmem:[%s667_s3] sm:$0xff]   ;;  %vm322_vm2 = vcmask 261120   ;;  %vm366_vm3 = vcmask 64512  }
  0x2c   : > { %s678_s19 = smov (!%p227_p2, %s592_s19), 1  ;;  %473 = vmatprep.subr.bf16.mxu1 %v554_v0  ;;  %477 = vmatprep.mubr.msk.bf16.mxu1 %vm555_vm0, %v554_v0  ;;  %v453_v6 = vld [vmem:[%s666_s2] ss:$0 sm:$0xff] }
  0x2d   : > { %s451_s11 = sshll.u32 %s678_s19, 3  ;;  %468 = vmatpush3.bf16.msra.mxu0 %v504_v1  ;;  %474 = vmatpush3.bf16.msra.mxu1 %v505_v4  ;;  %v456_v14 = vld [vmem:[%s668_s4] ss:$0 sm:$0xff] }
  0x2e   : > { %s230_s14 = scalar_lea.vmem %s664_s0, %s451_s11  ;;  %475 = vmatprep.subr.bf16.mxu1 %v554_v0  ;;  %s234_s27 = scalar_lea.vmem %s669_s5, %s451_s11 }
  0x2f   : > { %v236_v2 = vld [vmem:[%s230_s14] sm:$0xff] }
  0x30   : > { %v237_v3 = vpack.c.bf16 %v236_v2, %v236_v2 }
  0x31   : > { %476 = vmatpush3.bf16.msra.mxu1 %v506_v5 }
  0x32   : > { %470 = vmatmul.mubr.msk.bf16.vlgmr.msra.gmra.mrb[0].mxu0 %vm253_vm1, %v237_v3 }
 0x105   : > { %v291_v7 = vpop.f32.mrb[0].mxu0 }
 0x106   : > { %v292_v8 = vadd.f32 %v453_v6, %v291_v7  ;;  %v471_v9 = vpop.f32.mrb[1].mxu0 }
 0x107   : > { %v294_v10 = vpop.f32.mrb[2].mxu0 }
 0x108   : > { %v297_v11 = vmax.f32 %v292_v8, 0.0  ;;  %v472_v12 = vpop.f32.mrb[3].mxu0 }
 0x10a   : > { %v298_v13 = vpack.c.bf16 %v297_v11, %v297_v11 }
 0x10c   : > { %478 = vmatmul.mubr.msk.bf16.vlgmr.msra.gmra.mrb[0].mxu1 %vm322_vm2, %v298_v13 }
 0x1df   : > { %v360_v15 = vpop.f32.mrb[0].mxu1 }
 0x1e0   : > { %v361_v16 = vadd.f32 %v456_v14, %v360_v15  ;;  %v479_v17 = vpop.f32.mrb[1].mxu1 }
 0x1e1   : > { %v363_v18 = vpop.f32.mrb[2].mxu1 }
 0x1e2   : > { %v480_v19 = vpop.f32.mrb[3].mxu1  ;;  %v367_v20 = vsel %vm366_vm3, %v361_v16, -inf }
 0x1e3   : > { %368 = vmax.xlane.f32.xlu0 %v367_v20 }
 0x270   : > { %v369_v21 = vpop.xlane.xlu0 %368 }
 0x271   : > { %v370_v22 = vsub.f32 %v361_v16, %v369_v21 }
 0x273   : > { %v371_v23 = vmul.f32 1.442695, %v370_v22 }
 0x275   : > { %507 = vpow2.f32 %v371_v23 }
 0x27f   : > { %v508_v24 = vpop.eup %507 }
 0x280   : > { %v373_v25 = vsel %vm366_vm3, %v508_v24, 0.0 }
 0x281   : > { %374 = vadd.xlane.f32.xlu0 %v373_v25 }
 0x30e   : > { %v375_v26 = vpop.xlane.xlu0 %374 }
 0x30f   : > { %509 = vrcp.f32 %v375_v26 }
 0x319   : > { %v510_v27 = vpop.eup %509 }
 0x31a   : > { %v377_v28 = vmul.f32 %v510_v27, %v508_v24 }
 0x31c   : > { %378 = vst.msk [vmem:[%s234_s27] sm:$0xff] %vm366_vm3, %v377_v28 }
 0x31d PF: > { %s16_s18 = sadd.s32 1, %s549_s18  }
 0x31e   : > { %p13_p3 = scmp.ge.s32.totalorder %s16_s18, 4  }
 0x320   :  { %15 = sbr.rel (!%p13_p3) target bundleno = 1 (0x1), region = 75 }
 0x327   :  { %398 = vsyncpa [#allocation3], 1 }
 0x328   :  { %400 = vsyncpa [#allocation3 + $0x1], 1 }

</bundles_post_ra>
